<compile_context>
chip_gen: v6e
topology: v6e:2x2x1
jax: 0.10.0
libtpu: 0.0.40
codegen_flags: <defaults>
</compile_context>

<pallas_src>
import functools
import math

import jax
import jax.numpy as jnp
from jax.experimental import pallas as pl
from jax.experimental.pallas import tpu as pltpu


def _round_up(x, m):
    return ((x + m - 1) // m) * m


def _choose_batch_tiling(B):
    """Return (batch_tile, padded_batch)."""
    b8 = _round_up(max(B, 1), 8)
    if b8 <= 8:
        return b8, b8                       # nothing meaningful to split
    if b8 <= 512:
        tb = _round_up(-(-b8 // 2), 8)      # two parallel tiles -> both v7x TCs busy
        return tb, 2 * tb
    tb = 256                                # large batch: MXU-friendly 256-row tiles
    return tb, _round_up(b8, tb)


def _timestep_embedder_kernel(t_ref, freqs_ref, w1_ref, b1_ref, w2_ref, b2_ref,
                              o_ref, *, tb, half):
    """One grid step processes `tb` timesteps.

    t_ref    : (B_pad, 1)       all timesteps, resident; sliced per tile
    freqs_ref: (1, half)        sinusoid frequencies, resident
    w1_ref   : (F, H_pad)       mlp[0] weight, pre-transposed (in, out), bf16
    b1_ref   : (1, H_pad)       mlp[0] bias, f32
    w2_ref   : (H_pad, H_pad)   mlp[2] weight, pre-transposed (in, out), bf16
    b2_ref   : (1, H_pad)       mlp[2] bias, f32
    o_ref    : (tb, H_pad)      output tile, f32
    """
    start = pl.multiple_of(pl.program_id(0) * tb, tb)
    t = t_ref[pl.ds(start, tb), :]                         # (tb, 1) f32
    args = t * freqs_ref[...]                              # (tb, half) broadcast

    # emb = [cos | sin]; instead of concatenating, split the first matmul into
    # two K=half pushes against static slices of the resident weight.
    cos_e = jnp.cos(args).astype(w1_ref.dtype)
    sin_e = jnp.sin(args).astype(w1_ref.dtype)
    h = (jnp.dot(cos_e, w1_ref[:half, :], preferred_element_type=jnp.float32)
         + jnp.dot(sin_e, w1_ref[half:, :], preferred_element_type=jnp.float32)
         + b1_ref[...])
    h = h * jax.nn.sigmoid(h)                              # SiLU in f32
    out = (jnp.dot(h.astype(w2_ref.dtype), w2_ref[...],
                   preferred_element_type=jnp.float32) + b2_ref[...])
    o_ref[...] = out.astype(o_ref.dtype)


def prepare_timestep_embedder_params(w1, b1, w2, b2, *, frequency_embedding_size=256,
                                     max_period=10000, weight_dtype=jnp.bfloat16):
    """One-time parameter prep (hoisted out of the forward path).

    w1: (H, F), b1: (H,), w2: (H, H), b2: (H,)   (PyTorch nn.Linear layout).
    Weights are transposed to (in, out), cast to `weight_dtype`, and padded so
    the hidden/output lane dim is a multiple of 128.
    """
    F = frequency_embedding_size
    assert F % 2 == 0, "odd frequency_embedding_size not supported"
    half = F // 2
    H = int(w1.shape[0])
    H_pad = _round_up(H, 128)

    freqs = jnp.exp(
        -math.log(max_period) * jnp.arange(half, dtype=jnp.float32) / half
    ).reshape(1, half)

    w1_t = jnp.zeros((F, H_pad), weight_dtype).at[:, :H].set(
        jnp.asarray(w1, weight_dtype).T)
    w2_t = jnp.zeros((H_pad, H_pad), weight_dtype).at[:H, :H].set(
        jnp.asarray(w2, weight_dtype).T)
    b1_p = jnp.zeros((1, H_pad), jnp.float32).at[0, :H].set(
        jnp.asarray(b1, jnp.float32))
    b2_p = jnp.zeros((1, H_pad), jnp.float32).at[0, :H].set(
        jnp.asarray(b2, jnp.float32))

    return dict(freqs=freqs, w1=w1_t, b1=b1_p, w2=w2_t, b2=b2_p,
                F=F, half=half, H=H, H_pad=H_pad)


def timestep_embedder_fwd(t, params, *, batch_tile=None):
    """t: (B,) timesteps; params from prepare_timestep_embedder_params."""
    F, half, H, H_pad = params["F"], params["half"], params["H"], params["H_pad"]
    B = int(t.shape[0])

    if batch_tile is None:
        tb, b_pad = _choose_batch_tiling(B)
    else:
        tb = batch_tile
        b_pad = _round_up(max(B, 1), tb)

    # Pad t (padded rows are 0 -> cos/sin finite; rows are sliced off below).
    t_2d = jnp.zeros((b_pad, 1), jnp.float32).at[:B, 0].set(t.astype(jnp.float32))

    kernel = functools.partial(_timestep_embedder_kernel, tb=tb, half=half)

    # Size the scoped-VMEM limit from actual residents + tiles (generous margin).
    # For very large H (>= ~2048) add a grid axis over H_pad columns instead.
    w_itemsize = params["w1"].dtype.itemsize
    resident_bytes = (params["w1"].size + params["w2"].size) * w_itemsize
    resident_bytes += (params["freqs"].size + params["b1"].size
                       + params["b2"].size + b_pad) * 4
    tile_bytes = tb * H_pad * 4
    vmem_limit = int(max(8 << 20, min(2 * resident_bytes + 4 * tile_bytes + (4 << 20),
                                      100 << 20)))

    def _in_specs(resident_mode):
        def spec(shape):
            return pl.BlockSpec(shape, lambda b: (0,) * len(shape),
                                pipeline_mode=resident_mode)
        return [
            spec((b_pad, 1)),          # t (resident; sliced per tile in-kernel)
            spec((1, half)),           # freqs
            spec((F, H_pad)),          # W1^T
            spec((1, H_pad)),          # b1
            spec((H_pad, H_pad)),      # W2^T
            spec((1, H_pad)),          # b2
        ]

    def _call(resident_mode):
        return pl.pallas_call(
            kernel,
            out_shape=jax.ShapeDtypeStruct((b_pad, H_pad), jnp.float32),
            grid_spec=pltpu.PrefetchScalarGridSpec(
                num_scalar_prefetch=0,
                grid=(b_pad // tb,),
                in_specs=_in_specs(resident_mode),
                out_specs=pl.BlockSpec((tb, H_pad), lambda b: (b, 0)),
            ),
            compiler_params=pltpu.CompilerParams(
                dimension_semantics=("parallel",),
                vmem_limit_bytes=vmem_limit),
        )(t_2d, params["freqs"], params["w1"], params["b1"],
          params["w2"], params["b2"])

    try:
        # Residents never change across the grid -> single-buffer them.
        out = _call(pl.Buffered(1))
    except Exception:
        # Fallback for JAX versions that reject buffer_count=1: default buffering.
        out = _call(None)

    return out[:B, :H]


def timestep_embedder_ref(t, w1, b1, w2, b2, frequency_embedding_size=256,
                          max_period=10000, weight_dtype=jnp.float32):
    """Pure-JAX reference. weight_dtype=bf16 mimics the kernel's mixed precision."""
    half = frequency_embedding_size // 2
    freqs = jnp.exp(-math.log(max_period) * jnp.arange(half, dtype=jnp.float32) / half)
    args = t.astype(jnp.float32)[:, None] * freqs[None]
    emb = jnp.concatenate([jnp.cos(args), jnp.sin(args)], axis=-1)
    if weight_dtype == jnp.float32:
        hi = jax.lax.Precision.HIGHEST
        h = jnp.dot(emb, w1.T, precision=hi) + b1
        h = h * jax.nn.sigmoid(h)
        return jnp.dot(h, w2.T, precision=hi) + b2
    h = jnp.dot(emb.astype(weight_dtype), w1.T.astype(weight_dtype),
                preferred_element_type=jnp.float32) + b1
    h = h * jax.nn.sigmoid(h)
    return jnp.dot(h.astype(weight_dtype), w2.T.astype(weight_dtype),
                   preferred_element_type=jnp.float32) + b2


if __name__ == "__main__":
    # Small shapes consistent with the module: hidden_size=32, freq_emb_size=256.
    B, H, F = 2, 32, 256

    key = jax.random.PRNGKey(0)
    kt, k1, k2, k3, k4 = jax.random.split(key, 5)

    t = jax.random.uniform(kt, (B,), minval=0.0, maxval=100.0, dtype=jnp.float32)

    # PyTorch nn.Linear layout: weight (out, in), bias (out,)
    w1 = jax.random.normal(k1, (H, F), dtype=jnp.float32) * 0.02
    b1 = jax.random.normal(k2, (H,), dtype=jnp.float32) * 0.02
    w2 = jax.random.normal(k3, (H, H), dtype=jnp.float32) * 0.02
    b2 = jax.random.normal(k4, (H,), dtype=jnp.float32) * 0.02

    # One-time parameter prep (hoisted out of the forward path).
    params = prepare_timestep_embedder_params(w1, b1, w2, b2,
                                              frequency_embedding_size=F)
    out = timestep_embedder_fwd(t, params)
    out = jax.block_until_ready(out)
    assert out.shape == (B, H), out.shape

    # Tight check vs a reference with the same bf16 operand rounding.
    ref_bf16 = timestep_embedder_ref(t, w1, b1, w2, b2, F,
                                     weight_dtype=jnp.bfloat16)
    # Loose sanity check vs the full-f32 HIGHEST reference.
    ref_f32 = timestep_embedder_ref(t, w1, b1, w2, b2, F,
                                    weight_dtype=jnp.float32)
    err_bf16 = float(jnp.max(jnp.abs(out - ref_bf16)))
    err_f32 = float(jnp.max(jnp.abs(out - ref_f32)))
    assert jnp.allclose(out, ref_bf16, atol=1e-4, rtol=1e-4), \
        f"bf16-ref max err {err_bf16}"
    assert jnp.allclose(out, ref_f32, atol=1e-2, rtol=1e-2), \
        f"f32-ref max err {err_f32}"

    print("KERNEL_OK")
</pallas_src>

<mosaic_0001>
module attributes {stable_mosaic.version = 11 : i64} {
  func.func @_timestep_embedder_kernel(%arg0: i32, %arg1: memref<8x1xf32, #tpu.memory_space<vmem>>, %arg2: memref<1x128xf32, #tpu.memory_space<vmem>>, %arg3: memref<256x128xbf16, #tpu.memory_space<vmem>>, %arg4: memref<1x128xf32, #tpu.memory_space<vmem>>, %arg5: memref<128x128xbf16, #tpu.memory_space<vmem>>, %arg6: memref<1x128xf32, #tpu.memory_space<vmem>>, %arg7: memref<8x128xf32, #tpu.memory_space<vmem>>) attributes {dimension_semantics = [#tpu.dimension_semantics<parallel>], iteration_bounds = array<i64: 1>, scalar_prefetch = 0 : i64, scratch_operands = 0 : i64, tpu.core_type = #tpu.core_type<tc>, window_params = [{pipeline_mode = #tpu.pipeline_mode<synchronous>, transform_indices = @transform_0, window_bounds = array<i64: 8, 1>}, {pipeline_mode = #tpu.pipeline_mode<synchronous>, transform_indices = @transform_1, window_bounds = array<i64: 1, 128>}, {pipeline_mode = #tpu.pipeline_mode<synchronous>, transform_indices = @transform_2, window_bounds = array<i64: 256, 128>}, {pipeline_mode = #tpu.pipeline_mode<synchronous>, transform_indices = @transform_3, window_bounds = array<i64: 1, 128>}, {pipeline_mode = #tpu.pipeline_mode<synchronous>, transform_indices = @transform_4, window_bounds = array<i64: 128, 128>}, {pipeline_mode = #tpu.pipeline_mode<synchronous>, transform_indices = @transform_5, window_bounds = array<i64: 1, 128>}, {transform_indices = @transform_6, window_bounds = array<i64: 8, 128>}]} {
    %c8_i32 = arith.constant 8 : i32
    %0 = arith.muli %arg0, %c8_i32 : i32
    %1 = tpu.assume_multiple %0, 8 : i32
    %2 = arith.index_cast %1 : i32 to index
    %c0 = arith.constant 0 : index
    %3 = vector.load %arg1[%2, %c0] : memref<8x1xf32, #tpu.memory_space<vmem>>, vector<8x1xf32>
    %c0_0 = arith.constant 0 : index
    %c0_1 = arith.constant 0 : index
    %4 = vector.load %arg2[%c0_0, %c0_1] : memref<1x128xf32, #tpu.memory_space<vmem>>, vector<1x128xf32>
    %5 = vector.broadcast %3 : vector<8x1xf32> to vector<8x128xf32>
    %6 = vector.broadcast %4 : vector<1x128xf32> to vector<8x128xf32>
    %7 = arith.mulf %5, %6 : vector<8x128xf32>
    %8 = math.cos %7 : vector<8x128xf32>
    %9 = arith.truncf %8 : vector<8x128xf32> to vector<8x128xbf16>
    %10 = math.sin %7 : vector<8x128xf32>
    %11 = arith.truncf %10 : vector<8x128xf32> to vector<8x128xbf16>
    %c0_2 = arith.constant 0 : index
    %c0_3 = arith.constant 0 : index
    %12 = vector.load %arg3[%c0_2, %c0_3] : memref<256x128xbf16, #tpu.memory_space<vmem>>, vector<128x128xbf16>
    %cst = arith.constant dense<0.000000e+00> : vector<8x128xf32>
    %13 = tpu.matmul %9, %12, %cst {dimension_numbers = #tpu.dot_dimension_numbers<[1], [0], [0], [1], [0, 0, 1, 1], [], []>} : vector<8x128xbf16>, vector<128x128xbf16>, vector<8x128xf32> -> vector<8x128xf32>
    %c128 = arith.constant 128 : index
    %c0_4 = arith.constant 0 : index
    %14 = vector.load %arg3[%c128, %c0_4] : memref<256x128xbf16, #tpu.memory_space<vmem>>, vector<128x128xbf16>
    %cst_5 = arith.constant dense<0.000000e+00> : vector<8x128xf32>
    %15 = tpu.matmul %11, %14, %cst_5 {dimension_numbers = #tpu.dot_dimension_numbers<[1], [0], [0], [1], [0, 0, 1, 1], [], []>} : vector<8x128xbf16>, vector<128x128xbf16>, vector<8x128xf32> -> vector<8x128xf32>
    %16 = arith.addf %13, %15 : vector<8x128xf32>
    %c0_6 = arith.constant 0 : index
    %c0_7 = arith.constant 0 : index
    %17 = vector.load %arg4[%c0_6, %c0_7] : memref<1x128xf32, #tpu.memory_space<vmem>>, vector<1x128xf32>
    %18 = vector.broadcast %17 : vector<1x128xf32> to vector<8x128xf32>
    %19 = arith.addf %16, %18 : vector<8x128xf32>
    %20 = arith.negf %19 : vector<8x128xf32>
    %21 = math.exp %20 : vector<8x128xf32>
    %cst_8 = arith.constant 1.000000e+00 : f32
    %22 = vector.broadcast %cst_8 : f32 to vector<8x128xf32>
    %23 = arith.addf %22, %21 : vector<8x128xf32>
    %24 = arith.divf %22, %23 : vector<8x128xf32>
    %25 = arith.mulf %19, %24 : vector<8x128xf32>
    %26 = arith.truncf %25 : vector<8x128xf32> to vector<8x128xbf16>
    %c0_9 = arith.constant 0 : index
    %c0_10 = arith.constant 0 : index
    %27 = vector.load %arg5[%c0_9, %c0_10] : memref<128x128xbf16, #tpu.memory_space<vmem>>, vector<128x128xbf16>
    %cst_11 = arith.constant dense<0.000000e+00> : vector<8x128xf32>
    %28 = tpu.matmul %26, %27, %cst_11 {dimension_numbers = #tpu.dot_dimension_numbers<[1], [0], [0], [1], [0, 0, 1, 1], [], []>} : vector<8x128xbf16>, vector<128x128xbf16>, vector<8x128xf32> -> vector<8x128xf32>
    %c0_12 = arith.constant 0 : index
    %c0_13 = arith.constant 0 : index
    %29 = vector.load %arg6[%c0_12, %c0_13] : memref<1x128xf32, #tpu.memory_space<vmem>>, vector<1x128xf32>
    %30 = vector.broadcast %29 : vector<1x128xf32> to vector<8x128xf32>
    %31 = arith.addf %28, %30 : vector<8x128xf32>
    %c0_14 = arith.constant 0 : index
    %c0_15 = arith.constant 0 : index
    %32 = vector.load %arg7[%c0_14, %c0_15] : memref<8x128xf32, #tpu.memory_space<vmem>>, vector<8x128xf32>
    tpu.vector_store %arg7[%c0_14, %c0_15], %31 {strides = array<i32>} : memref<8x128xf32, #tpu.memory_space<vmem>>, vector<8x128xf32>,
    return
  }
  func.func @transform_0(%arg0: i32) -> (i32, i32) {
    %c0_i32 = arith.constant 0 : i32
    %c0_i32_0 = arith.constant 0 : i32
    %c0_i32_1 = arith.constant 0 : i32
    return %c0_i32, %c0_i32_0 : i32, i32
  }
  func.func @transform_1(%arg0: i32) -> (i32, i32) {
    %c0_i32 = arith.constant 0 : i32
    %c0_i32_0 = arith.constant 0 : i32
    %c0_i32_1 = arith.constant 0 : i32
    return %c0_i32, %c0_i32_0 : i32, i32
  }
  func.func @transform_2(%arg0: i32) -> (i32, i32) {
    %c0_i32 = arith.constant 0 : i32
    %c0_i32_0 = arith.constant 0 : i32
    %c0_i32_1 = arith.constant 0 : i32
    return %c0_i32, %c0_i32_0 : i32, i32
  }
  func.func @transform_3(%arg0: i32) -> (i32, i32) {
    %c0_i32 = arith.constant 0 : i32
    %c0_i32_0 = arith.constant 0 : i32
    %c0_i32_1 = arith.constant 0 : i32
    return %c0_i32, %c0_i32_0 : i32, i32
  }
  func.func @transform_4(%arg0: i32) -> (i32, i32) {
    %c0_i32 = arith.constant 0 : i32
    %c0_i32_0 = arith.constant 0 : i32
    %c0_i32_1 = arith.constant 0 : i32
    return %c0_i32, %c0_i32_0 : i32, i32
  }
  func.func @transform_5(%arg0: i32) -> (i32, i32) {
    %c0_i32 = arith.constant 0 : i32
    %c0_i32_0 = arith.constant 0 : i32
    %c0_i32_1 = arith.constant 0 : i32
    return %c0_i32, %c0_i32_0 : i32, i32
  }
  func.func @transform_6(%arg0: i32) -> (i32, i32) {
    %c0_i32 = arith.constant 0 : i32
    %c0_i32_0 = arith.constant 0 : i32
    return %arg0, %c0_i32 : i32, i32
  }
}

module attributes {stable_mosaic.version = 11 : i64} {
  func.func @_timestep_embedder_kernel(%arg0: i32, %arg1: memref<8x1xf32, #tpu.memory_space<vmem>>, %arg2: memref<1x128xf32, #tpu.memory_space<vmem>>, %arg3: memref<256x128xbf16, #tpu.memory_space<vmem>>, %arg4: memref<1x128xf32, #tpu.memory_space<vmem>>, %arg5: memref<128x128xbf16, #tpu.memory_space<vmem>>, %arg6: memref<1x128xf32, #tpu.memory_space<vmem>>, %arg7: memref<8x128xf32, #tpu.memory_space<vmem>>) attributes {dimension_semantics = [#tpu.dimension_semantics<parallel>], iteration_bounds = array<i64: 1>, scalar_prefetch = 0 : i64, scratch_operands = 0 : i64, tpu.core_type = #tpu.core_type<tc>, window_params = [{pipeline_mode = #tpu.pipeline_mode<synchronous>, transform_indices = @transform_0, window_bounds = array<i64: 8, 1>}, {pipeline_mode = #tpu.pipeline_mode<synchronous>, transform_indices = @transform_1, window_bounds = array<i64: 1, 128>}, {pipeline_mode = #tpu.pipeline_mode<synchronous>, transform_indices = @transform_2, window_bounds = array<i64: 256, 128>}, {pipeline_mode = #tpu.pipeline_mode<synchronous>, transform_indices = @transform_3, window_bounds = array<i64: 1, 128>}, {pipeline_mode = #tpu.pipeline_mode<synchronous>, transform_indices = @transform_4, window_bounds = array<i64: 128, 128>}, {pipeline_mode = #tpu.pipeline_mode<synchronous>, transform_indices = @transform_5, window_bounds = array<i64: 1, 128>}, {transform_indices = @transform_6, window_bounds = array<i64: 8, 128>}]} {
    %c8_i32 = arith.constant 8 : i32
    %0 = arith.muli %arg0, %c8_i32 : i32
    %1 = tpu.assume_multiple %0, 8 : i32
    %2 = arith.index_cast %1 : i32 to index
    %c0 = arith.constant 0 : index
    %3 = vector.load %arg1[%2, %c0] : memref<8x1xf32, #tpu.memory_space<vmem>>, vector<8x1xf32>
    %c0_0 = arith.constant 0 : index
    %c0_1 = arith.constant 0 : index
    %4 = vector.load %arg2[%c0_0, %c0_1] : memref<1x128xf32, #tpu.memory_space<vmem>>, vector<1x128xf32>
    %5 = vector.broadcast %3 : vector<8x1xf32> to vector<8x128xf32>
    %6 = vector.broadcast %4 : vector<1x128xf32> to vector<8x128xf32>
    %7 = arith.mulf %5, %6 : vector<8x128xf32>
    %8 = math.cos %7 : vector<8x128xf32>
    %9 = arith.truncf %8 : vector<8x128xf32> to vector<8x128xbf16>
    %10 = math.sin %7 : vector<8x128xf32>
    %11 = arith.truncf %10 : vector<8x128xf32> to vector<8x128xbf16>
    %c0_2 = arith.constant 0 : index
    %c0_3 = arith.constant 0 : index
    %12 = vector.load %arg3[%c0_2, %c0_3] : memref<256x128xbf16, #tpu.memory_space<vmem>>, vector<128x128xbf16>
    %cst = arith.constant dense<0.000000e+00> : vector<8x128xf32>
    %13 = tpu.matmul %9, %12, %cst {dimension_numbers = #tpu.dot_dimension_numbers<[1], [0], [0], [1], [0, 0, 1, 1], [], []>} : vector<8x128xbf16>, vector<128x128xbf16>, vector<8x128xf32> -> vector<8x128xf32>
    %c128 = arith.constant 128 : index
    %c0_4 = arith.constant 0 : index
    %14 = vector.load %arg3[%c128, %c0_4] : memref<256x128xbf16, #tpu.memory_space<vmem>>, vector<128x128xbf16>
    %cst_5 = arith.constant dense<0.000000e+00> : vector<8x128xf32>
    %15 = tpu.matmul %11, %14, %cst_5 {dimension_numbers = #tpu.dot_dimension_numbers<[1], [0], [0], [1], [0, 0, 1, 1], [], []>} : vector<8x128xbf16>, vector<128x128xbf16>, vector<8x128xf32> -> vector<8x128xf32>
    %16 = arith.addf %13, %15 : vector<8x128xf32>
    %c0_6 = arith.constant 0 : index
    %c0_7 = arith.constant 0 : index
    %17 = vector.load %arg4[%c0_6, %c0_7] : memref<1x128xf32, #tpu.memory_space<vmem>>, vector<1x128xf32>
    %18 = vector.broadcast %17 : vector<1x128xf32> to vector<8x128xf32>
    %19 = arith.addf %16, %18 : vector<8x128xf32>
    %20 = arith.negf %19 : vector<8x128xf32>
    %21 = math.exp %20 : vector<8x128xf32>
    %cst_8 = arith.constant 1.000000e+00 : f32
    %22 = vector.broadcast %cst_8 : f32 to vector<8x128xf32>
    %23 = arith.addf %22, %21 : vector<8x128xf32>
    %24 = arith.divf %22, %23 : vector<8x128xf32>
    %25 = arith.mulf %19, %24 : vector<8x128xf32>
    %26 = arith.truncf %25 : vector<8x128xf32> to vector<8x128xbf16>
    %c0_9 = arith.constant 0 : index
    %c0_10 = arith.constant 0 : index
    %27 = vector.load %arg5[%c0_9, %c0_10] : memref<128x128xbf16, #tpu.memory_space<vmem>>, vector<128x128xbf16>
    %cst_11 = arith.constant dense<0.000000e+00> : vector<8x128xf32>
    %28 = tpu.matmul %26, %27, %cst_11 {dimension_numbers = #tpu.dot_dimension_numbers<[1], [0], [0], [1], [0, 0, 1, 1], [], []>} : vector<8x128xbf16>, vector<128x128xbf16>, vector<8x128xf32> -> vector<8x128xf32>
    %c0_12 = arith.constant 0 : index
    %c0_13 = arith.constant 0 : index
    %29 = vector.load %arg6[%c0_12, %c0_13] : memref<1x128xf32, #tpu.memory_space<vmem>>, vector<1x128xf32>
    %30 = vector.broadcast %29 : vector<1x128xf32> to vector<8x128xf32>
    %31 = arith.addf %28, %30 : vector<8x128xf32>
    %c0_14 = arith.constant 0 : index
    %c0_15 = arith.constant 0 : index
    %32 = vector.load %arg7[%c0_14, %c0_15] : memref<8x128xf32, #tpu.memory_space<vmem>>, vector<8x128xf32>
    tpu.vector_store %arg7[%c0_14, %c0_15], %31 {strides = array<i32>} : memref<8x128xf32, #tpu.memory_space<vmem>>, vector<8x128xf32>,
    return
  }
  func.func @transform_0(%arg0: i32) -> (i32, i32) {
    %c0_i32 = arith.constant 0 : i32
    %c0_i32_0 = arith.constant 0 : i32
    %c0_i32_1 = arith.constant 0 : i32
    return %c0_i32, %c0_i32_0 : i32, i32
  }
  func.func @transform_1(%arg0: i32) -> (i32, i32) {
    %c0_i32 = arith.constant 0 : i32
    %c0_i32_0 = arith.constant 0 : i32
    %c0_i32_1 = arith.constant 0 : i32
    return %c0_i32, %c0_i32_0 : i32, i32
  }
  func.func @transform_2(%arg0: i32) -> (i32, i32) {
    %c0_i32 = arith.constant 0 : i32
    %c0_i32_0 = arith.constant 0 : i32
    %c0_i32_1 = arith.constant 0 : i32
    return %c0_i32, %c0_i32_0 : i32, i32
  }
  func.func @transform_3(%arg0: i32) -> (i32, i32) {
    %c0_i32 = arith.constant 0 : i32
    %c0_i32_0 = arith.constant 0 : i32
    %c0_i32_1 = arith.constant 0 : i32
    return %c0_i32, %c0_i32_0 : i32, i32
  }
  func.func @transform_4(%arg0: i32) -> (i32, i32) {
    %c0_i32 = arith.constant 0 : i32
    %c0_i32_0 = arith.constant 0 : i32
    %c0_i32_1 = arith.constant 0 : i32
    return %c0_i32, %c0_i32_0 : i32, i32
  }
  func.func @transform_5(%arg0: i32) -> (i32, i32) {
    %c0_i32 = arith.constant 0 : i32
    %c0_i32_0 = arith.constant 0 : i32
    %c0_i32_1 = arith.constant 0 : i32
    return %c0_i32, %c0_i32_0 : i32, i32
  }
  func.func @transform_6(%arg0: i32) -> (i32, i32) {
    %c0_i32 = arith.constant 0 : i32
    %c0_i32_0 = arith.constant 0 : i32
    return %arg0, %c0_i32 : i32, i32
  }
}

</mosaic_0001>

<bundles_post_ra>
// kernel: tpu_custom_call.1
= control target key start
LH: loop header
LB: loop body
LE: loop exit
PB: predicated region body
PF: predicated region fallthrough
CT: control target
= control target key end

     0   :  { %11 = vsyncpa [#allocation3], 0  ;;  %s991_s0 = inlined_call_operand.vmem [shape: f32[8,1], index: 0, kind: input, shape index: {}]   ;;  %s992_s1 = inlined_call_operand.vmem [shape: f32[1,128], index: 1, kind: input, shape index: {}]   ;;  %s993_s2 = inlined_call_operand.hbm [shape: bf16[256,128], index: 2, kind: input, shape index: {}]   ;;  %s994_s3 = inlined_call_operand.vmem [shape: f32[1,128], index: 3, kind: input, shape index: {}]   ;;  %s995_s4 = inlined_call_operand.hbm [shape: bf16[128,128], index: 4, kind: input, shape index: {}]   ;;  %s996_s5 = inlined_call_operand.vmem [shape: f32[1,128], index: 5, kind: input, shape index: {}]   ;;  %s997_s6 = inlined_call_operand.hbm [shape: f32[8,128], index: 6, kind: output, shape index: {}]  }
   0x1   :  { %12 = vsyncpa [#allocation6], 0 }
   0x2   :  { %13 = vsyncpa [#allocation4], 0  ;;  %s870_s21 = smov [#allocation2]  }
   0x3   :  { %s23_s22 = sshll.u32 %s870_s21, 4  ;;  %s24_s22 = int_to_ptr.vmem [resolvable:$true] %s23_s22 }
   0x4   :  { %s812_s23 = scalar_lea.vmem %s24_s22, 2048  ;;  %p817_p1 = scmp.lt.s32.totalorder %s24_s22, %s24_s22 }
   0x5   :  { %p813_p0 = scmp.ne.s32.totalorder %s24_s22, %s812_s23  ;;  %p818_p2 = scmp.lt.s32.totalorder %s812_s23, %s812_s23 }
   0x7   :  { %p819_p3 = por %p818_p2, %p817_p1 }
   0x9   :  { %p820_p4 = pnand %p819_p3, %p813_p0 }
   0xb   :  { %823 = shalt.err (!%p820_p4)
}
   0xc   :  { %s871_s24 = smov 64   ;;  %s872_s25 = smov 4  }
   0xd   :  { %29 = dma.hbm_to_vmem [thread:$0]  %s993_s2, 2048, %s24_s22, [#allocation3], %s871_s24, %s871_s24, %s872_s25  }
   0xe   :  { %s873_s28 = smov [#allocation5]  }
   0xf   :  { %s37_s29 = sshll.u32 %s873_s28, 4  ;;  %s38_s29 = int_to_ptr.vmem [resolvable:$true] %s37_s29 }
  0x10   :  { %s832_s30 = scalar_lea.vmem %s38_s29, 1024  ;;  %p837_p6 = scmp.lt.s32.totalorder %s38_s29, %s38_s29 }
  0x11   :  { %p833_p5 = scmp.ne.s32.totalorder %s38_s29, %s832_s30  ;;  %p838_p7 = scmp.lt.s32.totalorder %s832_s30, %s832_s30 }
  0x13   :  { %p839_p8 = por %p838_p7, %p837_p6 }
  0x15   :  { %p840_p9 = pnand %p839_p8, %p833_p5 }
  0x17   :  { %843 = shalt.err (!%p840_p9)
}
  0x18   :  { %43 = dma.hbm_to_vmem [thread:$0]  %s995_s4, 1024, %s38_s29, [#allocation6], %s871_s24, %s871_s24, %s872_s25  }
  0x19   :  { %864 = dma.done.wait [#allocation3], 2048  }
  0x1a   :  { %865 = vsyncadd [#allocation3], 4294965248 }
  0x1b   :  { %866 = dma.done.wait [#allocation6], 1024  }
  0x1c   :  { %867 = vsyncadd [#allocation6], 4294966272  ;;  %v874_v0 = vmov 0   ;;  %v55_v1 = vld [vmem:[%s991_s0] sm:$0xff]  ;;  %v772_v2 = vld [vmem:[#allocation2 + $0x78] sm:$0xff]   ;;  %v875_v4 = vmov 0.0  }
  0x1d   :  { %771 = vset.pattern.permute.xlu0 %v874_v0  ;;  %v773_v3 = vld [vmem:[#allocation2 + $0x38] sm:$0xff]   ;;  %693 = vmatprep.subr.bf16.mxu0 %v875_v4  ;;  %v774_v5 = vld [vmem:[#allocation2 + $0x70] sm:$0xff]   ;;  %v776_v7 = vld [vmem:[#allocation2 + $0x68] sm:$0xff]   ;;  %vm876_vm0 = vmmov 0   ;;  %v877_v32 = vmov 683565275  }
  0x1e   :  { %59 = vperm.xlu0 %771, %v55_v1   ;;  %713 = vmatprep.subr.bf16.mxu1 %v875_v4  ;;  %v775_v6 = vld [vmem:[#allocation2 + $0x30] sm:$0xff]   ;;  %v777_v8 = vld [vmem:[#allocation2 + $0x28] sm:$0xff]   ;;  %v778_v9 = vld [vmem:[#allocation2 + $0x60] sm:$0xff]   ;;  %v878_v34 = vmov 2475754826  }
  0x1f   :  { %694 = vmatpush3.bf16.msra.mxu0 %v772_v2  ;;  %714 = vmatpush3.bf16.msra.mxu1 %v773_v3  ;;  %v779_v10 = vld [vmem:[#allocation2 + $0x20] sm:$0xff]   ;;  %v780_v11 = vld [vmem:[#allocation2 + $0x58] sm:$0xff]   ;;  %v782_v13 = vld [vmem:[#allocation2 + $0x50] sm:$0xff]   ;;  %v879_v37 = vmov 2131351028  }
  0x20   :  { %695 = vmatprep.subr.bf16.mxu0 %v875_v4  ;;  %715 = vmatprep.subr.bf16.mxu1 %v875_v4  ;;  %v781_v12 = vld [vmem:[#allocation2 + $0x18] sm:$0xff]   ;;  %v783_v14 = vld [vmem:[#allocation2 + $0x10] sm:$0xff]   ;;  %v784_v15 = vld [vmem:[#allocation2 + $0x48] sm:$0xff]   ;;  %v880_v40 = vmov 2102212464  }
  0x21   :  { %709 = vmatprep.mubr.msk.bf16.mxu0 %vm876_vm0, %v875_v4  ;;  %729 = vmatprep.mubr.msk.bf16.mxu1 %vm876_vm0, %v875_v4  ;;  %v785_v16 = vld [vmem:[#allocation2 + $0x8] sm:$0xff]   ;;  %v786_v17 = vld [vmem:[#allocation2 + $0x40] sm:$0xff]   ;;  %v881_v43 = vmov 920167782   ;;  %v882_v46 = vmov 1326507024  }
  0x22   :  { %v787_v18 = vld [vmem:[#allocation2] sm:$0xff]  }
  0x23   :  { %696 = vmatpush3.bf16.msra.mxu0 %v774_v5  ;;  %716 = vmatpush3.bf16.msra.mxu1 %v775_v6  ;;  %v630_v19 = vld [vmem:[%s992_s1] ss:$0 sm:$0xff] }
  0x24   :  { %697 = vmatprep.subr.bf16.mxu0 %v875_v4  ;;  %717 = vmatprep.subr.bf16.mxu1 %v875_v4 }
  0x27   :  { %698 = vmatpush3.bf16.msra.mxu0 %v776_v7  ;;  %718 = vmatpush3.bf16.msra.mxu1 %v777_v8 }
  0x28   :  { %699 = vmatprep.subr.bf16.mxu0 %v875_v4  ;;  %719 = vmatprep.subr.bf16.mxu1 %v875_v4 }
  0x2b   :  { %700 = vmatpush3.bf16.msra.mxu0 %v778_v9  ;;  %720 = vmatpush3.bf16.msra.mxu1 %v779_v10 }
  0x2c   :  { %701 = vmatprep.subr.bf16.mxu0 %v875_v4  ;;  %721 = vmatprep.subr.bf16.mxu1 %v875_v4 }
  0x2f   :  { %702 = vmatpush3.bf16.msra.mxu0 %v780_v11  ;;  %722 = vmatpush3.bf16.msra.mxu1 %v781_v12 }
  0x30   :  { %703 = vmatprep.subr.bf16.mxu0 %v875_v4  ;;  %723 = vmatprep.subr.bf16.mxu1 %v875_v4 }
  0x33   :  { %704 = vmatpush3.bf16.msra.mxu0 %v782_v13  ;;  %724 = vmatpush3.bf16.msra.mxu1 %v783_v14 }
  0x34   :  { %705 = vmatprep.subr.bf16.mxu0 %v875_v4  ;;  %725 = vmatprep.subr.bf16.mxu1 %v875_v4 }
  0x37   :  { %706 = vmatpush3.bf16.msra.mxu0 %v784_v15  ;;  %726 = vmatpush3.bf16.msra.mxu1 %v785_v16 }
  0x38   :  { %707 = vmatprep.subr.bf16.mxu0 %v875_v4  ;;  %727 = vmatprep.subr.bf16.mxu1 %v875_v4 }
  0x3b   :  { %708 = vmatpush3.bf16.msra.mxu0 %v786_v17  ;;  %728 = vmatpush3.bf16.msra.mxu1 %v787_v18 }
  0x3c   :  { %733 = vmatprep.subr.bf16.mxu0 %v875_v4 }
  0x99   :  { %v60_v20 = vpop.permute.xlu0 %59 }
  0x9a   :  { %v952_v21 = vmul.f32 %v630_v19, %v60_v20 }
  0x9c   :  { %v72_v22 = vand.u32 2139095040, %v952_v21  ;;  %v69_v26 = vand.u32 2147483647, %v952_v21  ;;  %vm71_vm8 = vcmp.lt.s32.totalorder %v952_v21, 0 }
  0x9e   :  { %v73_v23 = vshrl.u32 %v72_v22, 23  ;;  %v76_v29 = vand.u32 8388607, %v69_v26  ;;  %vm70_vm9 = vcmp.le.f32.partialorder %v69_v26, 0.7853982 }
  0xa0   :  { %v631_v24 = vadd.s32 4294967169, %v73_v23  ;;  %v77_v48 = vor.u32 8388608, %v76_v29 }
  0xa2   :  { %v79_v25 = vadd.s32 1, %v631_v24  ;;  %v117_v62 = vshll.u32 %v77_v48, 8 }
  0xa4   :  { %vm80_vm1 = vcmp.gt.s32.totalorder %v79_v25, 0 }
  0xa5   :  { %v81_v27 = vsel %vm80_vm1, %v79_v25, 0  ;;  %vm161_vm1 = vweird.f32 %v952_v21 }
  0xa6   :  { %v83_v28 = vand.u32 31, %v81_v27  ;;  %v82_v31 = vshrl.u32 %v81_v27, 5 }
  0xa8   :  { %v84_v30 = vsub.s32 32, %v83_v28  ;;  %v86_v33 = vshll.u32 %v877_v32, %v83_v28  ;;  %v89_v35 = vshll.u32 %v878_v34, %v83_v28  ;;  %v92_v39 = vshll.u32 %v879_v37, %v83_v28 }
  0xa9   :  { %v95_v42 = vshll.u32 %v880_v40, %v83_v28  ;;  %v98_v45 = vshll.u32 %v881_v43, %v83_v28  ;;  %vm101_vm2 = vcmp.lt.s32.totalorder %v82_v31, 1  ;;  %vm104_vm3 = vcmp.lt.s32.totalorder %v82_v31, 4 }
  0xaa   :  { %v87_v36 = vshrl.u32 %v878_v34, %v84_v30  ;;  %v90_v38 = vshrl.u32 %v879_v37, %v84_v30  ;;  %v93_v41 = vshrl.u32 %v880_v40, %v84_v30  ;;  %v96_v44 = vshrl.u32 %v881_v43, %v84_v30 }
  0xab   :  { %v99_v47 = vshrl.u32 %v882_v46, %v84_v30  ;;  %v85_v57 = vshrl.u32 %v877_v32, %v84_v30  ;;  %vm103_vm4 = vcmp.lt.s32.totalorder %v82_v31, 3  ;;  %vm102_vm5 = vcmp.lt.s32.totalorder %v82_v31, 2 }
  0xac   :  { %v88_v49 = vor.u32 %v87_v36, %v86_v33  ;;  %v91_v50 = vor.u32 %v90_v38, %v89_v35  ;;  %v94_v51 = vor.u32 %v93_v41, %v92_v39  ;;  %v97_v52 = vor.u32 %v96_v44, %v95_v42 }
  0xad   :  { %v100_v53 = vor.u32 %v99_v47, %v98_v45 }
  0xae   :  { %v106_v54 = vsel %vm104_vm3, %v94_v51, 2102212464  ;;  %v109_v55 = vsel %vm101_vm2, %v88_v49, %v91_v50  ;;  %v113_v56 = vsel %vm101_vm2, %v91_v50, %v94_v51  ;;  %v110_v58 = vsel %vm104_vm3, %v97_v52, 920167782 }
  0xaf   :  { %v114_v59 = vsel %vm104_vm3, %v100_v53, 1326507024  ;;  %v111_v60 = vsel %vm103_vm4, %v94_v51, %v110_v58  ;;  %v105_v63 = vsel %vm101_vm2, %v85_v57, %v88_v49  ;;  %v107_v0 = vsel %vm103_vm4, %v91_v50, %v106_v54  ;;  %v788_v58 = vld [vmem:[#allocation5 + $0x38] sm:$0xff]  }
  0xb0   :  { %v115_v61 = vsel %vm103_vm4, %v97_v52, %v114_v59  ;;  %v112_v1 = vsel %vm102_vm5, %v109_v55, %v111_v60  ;;  %v108_v8 = vsel %vm102_vm5, %v105_v63, %v107_v0  ;;  %v789_v59 = vld [vmem:[#allocation5 + $0x30] sm:$0xff]   ;;  %v791_v60 = vld [vmem:[#allocation5 + $0x20] sm:$0xff]   ;;  %v794_v63 = vld [vmem:[#allocation5 + $0x8] sm:$0xff]  }
  0xb1   :  { %v116_v2 = vsel %vm102_vm5, %v113_v56, %v115_v61  ;;  %v961_v6 = vmul.u32.u64.low %v117_v62, %v112_v1  ;;  %v962_v7 = vmul.u32.u64.high %v117_v62, %v112_v1, %v961_v6  ;;  %v124_v10 = vmul.u32 %v117_v62, %v108_v8  ;;  %v792_v61 = vld [vmem:[#allocation5 + $0x18] sm:$0xff]   ;;  %v795_v0 = vld [vmem:[#allocation5] sm:$0xff]  }
  0xb2   :  { %v958_v3 = vmul.u32.u64.low %v117_v62, %v116_v2  ;;  %v959_v5 = vmul.u32.u64.high %v117_v62, %v116_v2, %v958_v3  ;;  %v793_v62 = vld [vmem:[#allocation5 + $0x10] sm:$0xff]  }
  0xb3   :  { %v127_v9 = vadd.s32 1, %v962_v7  ;;  %v655_v3 = vld [vmem:[%s994_s3] ss:$0 sm:$0xff]  ;;  %s883_s3 = smov [#allocation7]  }
  0xb4   :  { %vm126_vm6 = vc.u32 %v959_v5, %v961_v6  ;;  %v125_v23 = vadd.s32 %v961_v6, %v959_v5  ;;  %s620_s13 = sshll.u32 %s883_s3, 4  ;;  %s621_s13 = int_to_ptr.vmem [resolvable:$true] %s620_s13 }
  0xb5   :  { %v128_v11 = vsel %vm126_vm6, %v127_v9, %v962_v7  ;;  %s844_s14 = scalar_lea.vmem %s621_s13, 128  ;;  %p849_p11 = scmp.lt.s32.totalorder %s621_s13, %s621_s13 }
  0xb6   :  { %v129_v12 = vadd.s32 %v128_v11, %v124_v10  ;;  %p845_p10 = scmp.ne.s32.totalorder %s621_s13, %s844_s14  ;;  %p850_p12 = scmp.lt.s32.totalorder %s844_s14, %s844_s14 }
  0xb8   :  { %v130_v13 = vadd.s32 536870912, %v129_v12  ;;  %p851_p13 = por %p850_p12, %p849_p11 }
  0xba   :  { %v131_v14 = vshrl.u32 %v130_v13, 30  ;;  %p852_p0 = pnand %p851_p13, %p845_p10 }
  0xbc   :  { %v132_v15 = vshll.u32 %v131_v14, 30  ;;  %v155_v37 = vsub.s32 4, %v131_v14 }
  0xbe   :  { %v133_v16 = vsub.s32 %v129_v12, %v132_v15  ;;  %v156_v40 = vsel %vm71_vm8, %v155_v37, %v131_v14 }
  0xbf   :  { %v158_v41 = vsel %vm70_vm9, 0, %v156_v40 }
  0xc0   :  { %v135_v17 = vsub.s32 0, %v133_v16  ;;  %v266_v42 = vadd.s32 3, %v158_v41  ;;  %v162_v44 = vand.u32 3, %v158_v41 }
  0xc2   :  { %v632_v18 = vmin.u32 %v135_v17, %v133_v16  ;;  %v267_v43 = vand.u32 3, %v266_v42  ;;  %vm167_vm11 = vcmp.eq.s32.totalorder %v162_v44, 2  ;;  %vm164_vm13 = vcmp.eq.s32.totalorder %v162_v44, 0 }
  0xc3   :  { %vm163_vm15 = vcmp.lt.s32.totalorder %v162_v44, 2 }
  0xc4   :  { %v137_v19 = vclz %v632_v18  ;;  %vm272_vm10 = vcmp.eq.s32.totalorder %v267_v43, 2  ;;  %vm269_vm12 = vcmp.eq.s32.totalorder %v267_v43, 0  ;;  %vm268_vm14 = vcmp.lt.s32.totalorder %v267_v43, 2  ;;  %v657_v18 = vld [vmem:[%s996_s5] ss:$0 sm:$0xff] }
  0xc6   :  { %v633_v20 = vadd.s32 4294967294, %v137_v19 }
  0xc8   :  { %vm634_vm7 = vcmp.lt.s32.totalorder %v633_v20, 0 }
  0xc9   :  { %v140_v22 = vsel %vm634_vm7, 0, %v633_v20 }
  0xca   :  { %v141_v24 = vsub.s32 32, %v140_v22  ;;  %v145_v25 = vsub.s32 4294967266, %v140_v22  ;;  %v142_v27 = vshll.u32 %v133_v16, %v140_v22 }
  0xcc   :  { %v143_v28 = vshrl.u32 %v125_v23, %v141_v24  ;;  %v146_v29 = vadd.s32 127, %v145_v25 }
  0xce   :  { %v144_v30 = vor.u32 %v143_v28, %v142_v27  ;;  %v147_v31 = vshll.u32 %v146_v29, 23 }
  0xd0   :  { %v148_v32 = vor.u32 4788187, %v147_v31  ;;  %v151_v34 = vcvt.s32.f32 %v144_v30 }
  0xd2   :  { %v149_v33 = vand.u32 2147483647, %v148_v32 }
  0xd4   :  { %v152_v35 = vmul.f32 %v151_v34, %v149_v33 }
  0xd6   :  { %v153_v36 = vxor.u32 2147483648, %v152_v35 }
  0xd8   :  { %v154_v38 = vsel %vm71_vm8, %v153_v36, %v152_v35 }
  0xd9   :  { %v157_v39 = vsel %vm70_vm9, %v952_v21, %v154_v38  ;;  %v790_v21 = vld [vmem:[#allocation5 + $0x28] sm:$0xff]  }
  0xda   :  { %796 = vcosq.f32 %v157_v39 }
  0xdb   :  { %798 = vsinq.f32 %v157_v39 }
  0xe7   :  { %v797_v45 = vpop.eup %796 }
  0xe8   :  { %v799_v46 = vpop.eup %798  ;;  %v168_v47 = vxor.u32 2147483648, %v797_v45 }
  0xe9   :  { %v165_v48 = vxor.u32 2147483648, %v799_v46 }
  0xea   :  { %v274_v49 = vsel %vm272_vm10, %v168_v47, %v799_v46  ;;  %v169_v26 = vsel %vm167_vm11, %v168_v47, %v799_v46 }
  0xeb   :  { %v271_v50 = vsel %vm269_vm12, %v797_v45, %v165_v48  ;;  %v166_v51 = vsel %vm164_vm13, %v797_v45, %v165_v48 }
  0xec   :  { %v275_v52 = vsel %vm268_vm14, %v271_v50, %v274_v49  ;;  %v170_v53 = vsel %vm163_vm15, %v166_v51, %v169_v26 }
  0xed   :  { %v276_v54 = vsel %vm161_vm1, nan, %v275_v52  ;;  %v171_v55 = vsel %vm161_vm1, nan, %v170_v53 }
  0xee   :  { %v277_v56 = vpack.c.bf16 %v276_v54, %v276_v54  ;;  %v172_v57 = vpack.c.bf16 %v171_v55, %v171_v55 }
  0xf0   :  { %710 = vmatmul.mubr.bf16.vlgmr.msra.gmra.mxu0 %v277_v56  ;;  %730 = vmatmul.mubr.bf16.vlgmr.msra.gmra.mxu1 %v172_v57 }
  0xf1   :  { %749 = vmatprep.mubr.msk.bf16.mxu0 %vm876_vm0, %v875_v4  ;;  %734 = vmatpush3.bf16.msra.mxu0 %v788_v58 }
  0xf2   :  { %735 = vmatprep.subr.bf16.mxu0 %v875_v4 }
  0xf5   :  { %736 = vmatpush3.bf16.msra.mxu0 %v789_v59 }
  0xf6   :  { %737 = vmatprep.subr.bf16.mxu0 %v875_v4 }
  0xf9   :  { %738 = vmatpush3.bf16.msra.mxu0 %v790_v21 }
  0xfa   :  { %739 = vmatprep.subr.bf16.mxu0 %v875_v4 }
  0xfd   :  { %740 = vmatpush3.bf16.msra.mxu0 %v791_v60 }
  0xfe   :  { %741 = vmatprep.subr.bf16.mxu0 %v875_v4 }
 0x101   :  { %742 = vmatpush3.bf16.msra.mxu0 %v792_v61 }
 0x102   :  { %743 = vmatprep.subr.bf16.mxu0 %v875_v4 }
 0x105   :  { %744 = vmatpush3.bf16.msra.mxu0 %v793_v62 }
 0x106   :  { %745 = vmatprep.subr.bf16.mxu0 %v875_v4 }
 0x109   :  { %746 = vmatpush3.bf16.msra.mxu0 %v794_v63 }
 0x10a   :  { %747 = vmatprep.subr.bf16.mxu0 %v875_v4 }
 0x10d   :  { %748 = vmatpush3.bf16.msra.mxu0 %v795_v0 }
 0x1b0   :  { %v392_v1 = vpop.f32.mrf.mxu0  ;;  %v480_v2 = vpop.f32.mrf.mxu1 }
 0x1b1   :  { %v481_v5 = vadd.f32 %v480_v2, %v392_v1 }
 0x1b2   :  { %v711_v6 = vpop.f32.mrf.mxu0  ;;  %v731_v7 = vpop.f32.mrf.mxu1 }
 0x1b3   :  { %v493_v8 = vadd.f32 %v655_v3, %v481_v5 }
 0x1b4   :  { %v395_v9 = vpop.f32.mrf.mxu0  ;;  %v483_v10 = vpop.f32.mrf.mxu1 }
 0x1b5   :  { %v656_v11 = vmul.f32 -1.442695, %v493_v8 }
 0x1b6   :  { %v712_v12 = vpop.f32.mrf.mxu0  ;;  %v732_v13 = vpop.f32.mrf.mxu1 }
 0x1b7   :  { %800 = vpow2.f32 %v656_v11 }
 0x1c4   :  { %v801_v14 = vpop.eup %800 }
 0x1c5   :  { %v497_v4 = vadd.f32 1.0, %v801_v14 }
 0x1c7   :  { %802 = vrcp.f32 %v497_v4 }
 0x1d4   :  { %v803_v15 = vpop.eup %802 }
 0x1d5   :  { %v500_v16 = vmul.f32 %v803_v15, %v493_v8 }
 0x1d7   :  { %v501_v17 = vpack.c.bf16 %v500_v16, %v500_v16 }
 0x1d9   :  { %750 = vmatmul.mubr.bf16.vlgmr.msra.gmra.mxu0 %v501_v17 }
 0x299   :  { %v607_v19 = vpop.f32.mrf.mxu0 }
 0x29a   :  { %v608_v20 = vadd.f32 %v657_v18, %v607_v19 }
 0x29b   :  { %v751_v22 = vpop.f32.mrf.mxu0 }
 0x29c   :  { %613 = vst [vmem:[#allocation7] sm:$0xff] %v608_v20 }
 0x29d   :  { %v610_v23 = vpop.f32.mrf.mxu0 }
 0x29e   :  { %855 = shalt.err (!%p852_p0)
}
 0x29f   :  { %623 = dma.vmem_to_hbm [thread:$0]  %s621_s13, 128, %s997_s6, [#allocation4]   ;;  %v752_v24 = vpop.f32.mrf.mxu0 }
 0x2a0   :  { %868 = dma.done.wait [#allocation4], 128  }
 0x2a1   :  { %869 = vsyncadd [#allocation4], 4294967168 }
 0x2a2   :  { %627 = vsyncpa [#allocation3], 1 }
 0x2a3   :  { %628 = vsyncpa [#allocation6], 1 }
 0x2a4   :  { %629 = vsyncpa [#allocation4], 1 }

// kernel: tpu_custom_call.1
= control target key start
LH: loop header
LB: loop body
LE: loop exit
PB: predicated region body
PF: predicated region fallthrough
CT: control target
= control target key end

     0   :  { %11 = vsyncpa [#allocation3], 0  ;;  %s991_s0 = inlined_call_operand.vmem [shape: f32[8,1], index: 0, kind: input, shape index: {}]   ;;  %s992_s1 = inlined_call_operand.vmem [shape: f32[1,128], index: 1, kind: input, shape index: {}]   ;;  %s993_s2 = inlined_call_operand.hbm [shape: bf16[256,128], index: 2, kind: input, shape index: {}]   ;;  %s994_s3 = inlined_call_operand.vmem [shape: f32[1,128], index: 3, kind: input, shape index: {}]   ;;  %s995_s4 = inlined_call_operand.hbm [shape: bf16[128,128], index: 4, kind: input, shape index: {}]   ;;  %s996_s5 = inlined_call_operand.vmem [shape: f32[1,128], index: 5, kind: input, shape index: {}]   ;;  %s997_s6 = inlined_call_operand.hbm [shape: f32[8,128], index: 6, kind: output, shape index: {}]  }
   0x1   :  { %12 = vsyncpa [#allocation6], 0 }
   0x2   :  { %13 = vsyncpa [#allocation4], 0  ;;  %s870_s21 = smov [#allocation2]  }
   0x3   :  { %s23_s22 = sshll.u32 %s870_s21, 4  ;;  %s24_s22 = int_to_ptr.vmem [resolvable:$true] %s23_s22 }
   0x4   :  { %s812_s23 = scalar_lea.vmem %s24_s22, 2048  ;;  %p817_p1 = scmp.lt.s32.totalorder %s24_s22, %s24_s22 }
   0x5   :  { %p813_p0 = scmp.ne.s32.totalorder %s24_s22, %s812_s23  ;;  %p818_p2 = scmp.lt.s32.totalorder %s812_s23, %s812_s23 }
   0x7   :  { %p819_p3 = por %p818_p2, %p817_p1 }
   0x9   :  { %p820_p4 = pnand %p819_p3, %p813_p0 }
   0xb   :  { %823 = shalt.err (!%p820_p4)
}
   0xc   :  { %s871_s24 = smov 64   ;;  %s872_s25 = smov 4  }
   0xd   :  { %29 = dma.hbm_to_vmem [thread:$0]  %s993_s2, 2048, %s24_s22, [#allocation3], %s871_s24, %s871_s24, %s872_s25  }
   0xe   :  { %s873_s28 = smov [#allocation5]  }
   0xf   :  { %s37_s29 = sshll.u32 %s873_s28, 4  ;;  %s38_s29 = int_to_ptr.vmem [resolvable:$true] %s37_s29 }
  0x10   :  { %s832_s30 = scalar_lea.vmem %s38_s29, 1024  ;;  %p837_p6 = scmp.lt.s32.totalorder %s38_s29, %s38_s29 }
  0x11   :  { %p833_p5 = scmp.ne.s32.totalorder %s38_s29, %s832_s30  ;;  %p838_p7 = scmp.lt.s32.totalorder %s832_s30, %s832_s30 }
  0x13   :  { %p839_p8 = por %p838_p7, %p837_p6 }
  0x15   :  { %p840_p9 = pnand %p839_p8, %p833_p5 }
  0x17   :  { %843 = shalt.err (!%p840_p9)
}
  0x18   :  { %43 = dma.hbm_to_vmem [thread:$0]  %s995_s4, 1024, %s38_s29, [#allocation6], %s871_s24, %s871_s24, %s872_s25  }
  0x19   :  { %864 = dma.done.wait [#allocation3], 2048  }
  0x1a   :  { %865 = vsyncadd [#allocation3], 4294965248 }
  0x1b   :  { %866 = dma.done.wait [#allocation6], 1024  }
  0x1c   :  { %867 = vsyncadd [#allocation6], 4294966272  ;;  %v874_v0 = vmov 0   ;;  %v55_v1 = vld [vmem:[%s991_s0] sm:$0xff]  ;;  %v772_v2 = vld [vmem:[#allocation2 + $0x78] sm:$0xff]   ;;  %v875_v4 = vmov 0.0  }
  0x1d   :  { %771 = vset.pattern.permute.xlu0 %v874_v0  ;;  %v773_v3 = vld [vmem:[#allocation2 + $0x38] sm:$0xff]   ;;  %693 = vmatprep.subr.bf16.mxu0 %v875_v4  ;;  %v774_v5 = vld [vmem:[#allocation2 + $0x70] sm:$0xff]   ;;  %v776_v7 = vld [vmem:[#allocation2 + $0x68] sm:$0xff]   ;;  %vm876_vm0 = vmmov 0   ;;  %v877_v32 = vmov 683565275  }
  0x1e   :  { %59 = vperm.xlu0 %771, %v55_v1   ;;  %713 = vmatprep.subr.bf16.mxu1 %v875_v4  ;;  %v775_v6 = vld [vmem:[#allocation2 + $0x30] sm:$0xff]   ;;  %v777_v8 = vld [vmem:[#allocation2 + $0x28] sm:$0xff]   ;;  %v778_v9 = vld [vmem:[#allocation2 + $0x60] sm:$0xff]   ;;  %v878_v34 = vmov 2475754826  }
  0x1f   :  { %694 = vmatpush3.bf16.msra.mxu0 %v772_v2  ;;  %714 = vmatpush3.bf16.msra.mxu1 %v773_v3  ;;  %v779_v10 = vld [vmem:[#allocation2 + $0x20] sm:$0xff]   ;;  %v780_v11 = vld [vmem:[#allocation2 + $0x58] sm:$0xff]   ;;  %v782_v13 = vld [vmem:[#allocation2 + $0x50] sm:$0xff]   ;;  %v879_v37 = vmov 2131351028  }
  0x20   :  { %695 = vmatprep.subr.bf16.mxu0 %v875_v4  ;;  %715 = vmatprep.subr.bf16.mxu1 %v875_v4  ;;  %v781_v12 = vld [vmem:[#allocation2 + $0x18] sm:$0xff]   ;;  %v783_v14 = vld [vmem:[#allocation2 + $0x10] sm:$0xff]   ;;  %v784_v15 = vld [vmem:[#allocation2 + $0x48] sm:$0xff]   ;;  %v880_v40 = vmov 2102212464  }
  0x21   :  { %709 = vmatprep.mubr.msk.bf16.mxu0 %vm876_vm0, %v875_v4  ;;  %729 = vmatprep.mubr.msk.bf16.mxu1 %vm876_vm0, %v875_v4  ;;  %v785_v16 = vld [vmem:[#allocation2 + $0x8] sm:$0xff]   ;;  %v786_v17 = vld [vmem:[#allocation2 + $0x40] sm:$0xff]   ;;  %v881_v43 = vmov 920167782   ;;  %v882_v46 = vmov 1326507024  }
  0x22   :  { %v787_v18 = vld [vmem:[#allocation2] sm:$0xff]  }
  0x23   :  { %696 = vmatpush3.bf16.msra.mxu0 %v774_v5  ;;  %716 = vmatpush3.bf16.msra.mxu1 %v775_v6  ;;  %v630_v19 = vld [vmem:[%s992_s1] ss:$0 sm:$0xff] }
  0x24   :  { %697 = vmatprep.subr.bf16.mxu0 %v875_v4  ;;  %717 = vmatprep.subr.bf16.mxu1 %v875_v4 }
  0x27   :  { %698 = vmatpush3.bf16.msra.mxu0 %v776_v7  ;;  %718 = vmatpush3.bf16.msra.mxu1 %v777_v8 }
  0x28   :  { %699 = vmatprep.subr.bf16.mxu0 %v875_v4  ;;  %719 = vmatprep.subr.bf16.mxu1 %v875_v4 }
  0x2b   :  { %700 = vmatpush3.bf16.msra.mxu0 %v778_v9  ;;  %720 = vmatpush3.bf16.msra.mxu1 %v779_v10 }
  0x2c   :  { %701 = vmatprep.subr.bf16.mxu0 %v875_v4  ;;  %721 = vmatprep.subr.bf16.mxu1 %v875_v4 }
  0x2f   :  { %702 = vmatpush3.bf16.msra.mxu0 %v780_v11  ;;  %722 = vmatpush3.bf16.msra.mxu1 %v781_v12 }
  0x30   :  { %703 = vmatprep.subr.bf16.mxu0 %v875_v4  ;;  %723 = vmatprep.subr.bf16.mxu1 %v875_v4 }
  0x33   :  { %704 = vmatpush3.bf16.msra.mxu0 %v782_v13  ;;  %724 = vmatpush3.bf16.msra.mxu1 %v783_v14 }
  0x34   :  { %705 = vmatprep.subr.bf16.mxu0 %v875_v4  ;;  %725 = vmatprep.subr.bf16.mxu1 %v875_v4 }
  0x37   :  { %706 = vmatpush3.bf16.msra.mxu0 %v784_v15  ;;  %726 = vmatpush3.bf16.msra.mxu1 %v785_v16 }
  0x38   :  { %707 = vmatprep.subr.bf16.mxu0 %v875_v4  ;;  %727 = vmatprep.subr.bf16.mxu1 %v875_v4 }
  0x3b   :  { %708 = vmatpush3.bf16.msra.mxu0 %v786_v17  ;;  %728 = vmatpush3.bf16.msra.mxu1 %v787_v18 }
  0x3c   :  { %733 = vmatprep.subr.bf16.mxu0 %v875_v4 }
  0x99   :  { %v60_v20 = vpop.permute.xlu0 %59 }
  0x9a   :  { %v952_v21 = vmul.f32 %v630_v19, %v60_v20 }
  0x9c   :  { %v72_v22 = vand.u32 2139095040, %v952_v21  ;;  %v69_v26 = vand.u32 2147483647, %v952_v21  ;;  %vm71_vm8 = vcmp.lt.s32.totalorder %v952_v21, 0 }
  0x9e   :  { %v73_v23 = vshrl.u32 %v72_v22, 23  ;;  %v76_v29 = vand.u32 8388607, %v69_v26  ;;  %vm70_vm9 = vcmp.le.f32.partialorder %v69_v26, 0.7853982 }
  0xa0   :  { %v631_v24 = vadd.s32 4294967169, %v73_v23  ;;  %v77_v48 = vor.u32 8388608, %v76_v29 }
  0xa2   :  { %v79_v25 = vadd.s32 1, %v631_v24  ;;  %v117_v62 = vshll.u32 %v77_v48, 8 }
  0xa4   :  { %vm80_vm1 = vcmp.gt.s32.totalorder %v79_v25, 0 }
  0xa5   :  { %v81_v27 = vsel %vm80_vm1, %v79_v25, 0  ;;  %vm161_vm1 = vweird.f32 %v952_v21 }
  0xa6   :  { %v83_v28 = vand.u32 31, %v81_v27  ;;  %v82_v31 = vshrl.u32 %v81_v27, 5 }
  0xa8   :  { %v84_v30 = vsub.s32 32, %v83_v28  ;;  %v86_v33 = vshll.u32 %v877_v32, %v83_v28  ;;  %v89_v35 = vshll.u32 %v878_v34, %v83_v28  ;;  %v92_v39 = vshll.u32 %v879_v37, %v83_v28 }
  0xa9   :  { %v95_v42 = vshll.u32 %v880_v40, %v83_v28  ;;  %v98_v45 = vshll.u32 %v881_v43, %v83_v28  ;;  %vm101_vm2 = vcmp.lt.s32.totalorder %v82_v31, 1  ;;  %vm104_vm3 = vcmp.lt.s32.totalorder %v82_v31, 4 }
  0xaa   :  { %v87_v36 = vshrl.u32 %v878_v34, %v84_v30  ;;  %v90_v38 = vshrl.u32 %v879_v37, %v84_v30  ;;  %v93_v41 = vshrl.u32 %v880_v40, %v84_v30  ;;  %v96_v44 = vshrl.u32 %v881_v43, %v84_v30 }
  0xab   :  { %v99_v47 = vshrl.u32 %v882_v46, %v84_v30  ;;  %v85_v57 = vshrl.u32 %v877_v32, %v84_v30  ;;  %vm103_vm4 = vcmp.lt.s32.totalorder %v82_v31, 3  ;;  %vm102_vm5 = vcmp.lt.s32.totalorder %v82_v31, 2 }
  0xac   :  { %v88_v49 = vor.u32 %v87_v36, %v86_v33  ;;  %v91_v50 = vor.u32 %v90_v38, %v89_v35  ;;  %v94_v51 = vor.u32 %v93_v41, %v92_v39  ;;  %v97_v52 = vor.u32 %v96_v44, %v95_v42 }
  0xad   :  { %v100_v53 = vor.u32 %v99_v47, %v98_v45 }
  0xae   :  { %v106_v54 = vsel %vm104_vm3, %v94_v51, 2102212464  ;;  %v109_v55 = vsel %vm101_vm2, %v88_v49, %v91_v50  ;;  %v113_v56 = vsel %vm101_vm2, %v91_v50, %v94_v51  ;;  %v110_v58 = vsel %vm104_vm3, %v97_v52, 920167782 }
  0xaf   :  { %v114_v59 = vsel %vm104_vm3, %v100_v53, 1326507024  ;;  %v111_v60 = vsel %vm103_vm4, %v94_v51, %v110_v58  ;;  %v105_v63 = vsel %vm101_vm2, %v85_v57, %v88_v49  ;;  %v107_v0 = vsel %vm103_vm4, %v91_v50, %v106_v54  ;;  %v788_v58 = vld [vmem:[#allocation5 + $0x38] sm:$0xff]  }
  0xb0   :  { %v115_v61 = vsel %vm103_vm4, %v97_v52, %v114_v59  ;;  %v112_v1 = vsel %vm102_vm5, %v109_v55, %v111_v60  ;;  %v108_v8 = vsel %vm102_vm5, %v105_v63, %v107_v0  ;;  %v789_v59 = vld [vmem:[#allocation5 + $0x30] sm:$0xff]   ;;  %v791_v60 = vld [vmem:[#allocation5 + $0x20] sm:$0xff]   ;;  %v794_v63 = vld [vmem:[#allocation5 + $0x8] sm:$0xff]  }
  0xb1   :  { %v116_v2 = vsel %vm102_vm5, %v113_v56, %v115_v61  ;;  %v961_v6 = vmul.u32.u64.low %v117_v62, %v112_v1  ;;  %v962_v7 = vmul.u32.u64.high %v117_v62, %v112_v1, %v961_v6  ;;  %v124_v10 = vmul.u32 %v117_v62, %v108_v8  ;;  %v792_v61 = vld [vmem:[#allocation5 + $0x18] sm:$0xff]   ;;  %v795_v0 = vld [vmem:[#allocation5] sm:$0xff]  }
  0xb2   :  { %v958_v3 = vmul.u32.u64.low %v117_v62, %v116_v2  ;;  %v959_v5 = vmul.u32.u64.high %v117_v62, %v116_v2, %v958_v3  ;;  %v793_v62 = vld [vmem:[#allocation5 + $0x10] sm:$0xff]  }
  0xb3   :  { %v127_v9 = vadd.s32 1, %v962_v7  ;;  %v655_v3 = vld [vmem:[%s994_s3] ss:$0 sm:$0xff]  ;;  %s883_s3 = smov [#allocation7]  }
  0xb4   :  { %vm126_vm6 = vc.u32 %v959_v5, %v961_v6  ;;  %v125_v23 = vadd.s32 %v961_v6, %v959_v5  ;;  %s620_s13 = sshll.u32 %s883_s3, 4  ;;  %s621_s13 = int_to_ptr.vmem [resolvable:$true] %s620_s13 }
  0xb5   :  { %v128_v11 = vsel %vm126_vm6, %v127_v9, %v962_v7  ;;  %s844_s14 = scalar_lea.vmem %s621_s13, 128  ;;  %p849_p11 = scmp.lt.s32.totalorder %s621_s13, %s621_s13 }
  0xb6   :  { %v129_v12 = vadd.s32 %v128_v11, %v124_v10  ;;  %p845_p10 = scmp.ne.s32.totalorder %s621_s13, %s844_s14  ;;  %p850_p12 = scmp.lt.s32.totalorder %s844_s14, %s844_s14 }
  0xb8   :  { %v130_v13 = vadd.s32 536870912, %v129_v12  ;;  %p851_p13 = por %p850_p12, %p849_p11 }
  0xba   :  { %v131_v14 = vshrl.u32 %v130_v13, 30  ;;  %p852_p0 = pnand %p851_p13, %p845_p10 }
  0xbc   :  { %v132_v15 = vshll.u32 %v131_v14, 30  ;;  %v155_v37 = vsub.s32 4, %v131_v14 }
  0xbe   :  { %v133_v16 = vsub.s32 %v129_v12, %v132_v15  ;;  %v156_v40 = vsel %vm71_vm8, %v155_v37, %v131_v14 }
  0xbf   :  { %v158_v41 = vsel %vm70_vm9, 0, %v156_v40 }
  0xc0   :  { %v135_v17 = vsub.s32 0, %v133_v16  ;;  %v266_v42 = vadd.s32 3, %v158_v41  ;;  %v162_v44 = vand.u32 3, %v158_v41 }
  0xc2   :  { %v632_v18 = vmin.u32 %v135_v17, %v133_v16  ;;  %v267_v43 = vand.u32 3, %v266_v42  ;;  %vm167_vm11 = vcmp.eq.s32.totalorder %v162_v44, 2  ;;  %vm164_vm13 = vcmp.eq.s32.totalorder %v162_v44, 0 }
  0xc3   :  { %vm163_vm15 = vcmp.lt.s32.totalorder %v162_v44, 2 }
  0xc4   :  { %v137_v19 = vclz %v632_v18  ;;  %vm272_vm10 = vcmp.eq.s32.totalorder %v267_v43, 2  ;;  %vm269_vm12 = vcmp.eq.s32.totalorder %v267_v43, 0  ;;  %vm268_vm14 = vcmp.lt.s32.totalorder %v267_v43, 2  ;;  %v657_v18 = vld [vmem:[%s996_s5] ss:$0 sm:$0xff] }
  0xc6   :  { %v633_v20 = vadd.s32 4294967294, %v137_v19 }
  0xc8   :  { %vm634_vm7 = vcmp.lt.s32.totalorder %v633_v20, 0 }
  0xc9   :  { %v140_v22 = vsel %vm634_vm7, 0, %v633_v20 }
  0xca   :  { %v141_v24 = vsub.s32 32, %v140_v22  ;;  %v145_v25 = vsub.s32 4294967266, %v140_v22  ;;  %v142_v27 = vshll.u32 %v133_v16, %v140_v22 }
  0xcc   :  { %v143_v28 = vshrl.u32 %v125_v23, %v141_v24  ;;  %v146_v29 = vadd.s32 127, %v145_v25 }
  0xce   :  { %v144_v30 = vor.u32 %v143_v28, %v142_v27  ;;  %v147_v31 = vshll.u32 %v146_v29, 23 }
  0xd0   :  { %v148_v32 = vor.u32 4788187, %v147_v31  ;;  %v151_v34 = vcvt.s32.f32 %v144_v30 }
  0xd2   :  { %v149_v33 = vand.u32 2147483647, %v148_v32 }
  0xd4   :  { %v152_v35 = vmul.f32 %v151_v34, %v149_v33 }
  0xd6   :  { %v153_v36 = vxor.u32 2147483648, %v152_v35 }
  0xd8   :  { %v154_v38 = vsel %vm71_vm8, %v153_v36, %v152_v35 }
  0xd9   :  { %v157_v39 = vsel %vm70_vm9, %v952_v21, %v154_v38  ;;  %v790_v21 = vld [vmem:[#allocation5 + $0x28] sm:$0xff]  }
  0xda   :  { %796 = vcosq.f32 %v157_v39 }
  0xdb   :  { %798 = vsinq.f32 %v157_v39 }
  0xe7   :  { %v797_v45 = vpop.eup %796 }
  0xe8   :  { %v799_v46 = vpop.eup %798  ;;  %v168_v47 = vxor.u32 2147483648, %v797_v45 }
  0xe9   :  { %v165_v48 = vxor.u32 2147483648, %v799_v46 }
  0xea   :  { %v274_v49 = vsel %vm272_vm10, %v168_v47, %v799_v46  ;;  %v169_v26 = vsel %vm167_vm11, %v168_v47, %v799_v46 }
  0xeb   :  { %v271_v50 = vsel %vm269_vm12, %v797_v45, %v165_v48  ;;  %v166_v51 = vsel %vm164_vm13, %v797_v45, %v165_v48 }
  0xec   :  { %v275_v52 = vsel %vm268_vm14, %v271_v50, %v274_v49  ;;  %v170_v53 = vsel %vm163_vm15, %v166_v51, %v169_v26 }
  0xed   :  { %v276_v54 = vsel %vm161_vm1, nan, %v275_v52  ;;  %v171_v55 = vsel %vm161_vm1, nan, %v170_v53 }
  0xee   :  { %v277_v56 = vpack.c.bf16 %v276_v54, %v276_v54  ;;  %v172_v57 = vpack.c.bf16 %v171_v55, %v171_v55 }
  0xf0   :  { %710 = vmatmul.mubr.bf16.vlgmr.msra.gmra.mxu0 %v277_v56  ;;  %730 = vmatmul.mubr.bf16.vlgmr.msra.gmra.mxu1 %v172_v57 }
  0xf1   :  { %749 = vmatprep.mubr.msk.bf16.mxu0 %vm876_vm0, %v875_v4  ;;  %734 = vmatpush3.bf16.msra.mxu0 %v788_v58 }
  0xf2   :  { %735 = vmatprep.subr.bf16.mxu0 %v875_v4 }
  0xf5   :  { %736 = vmatpush3.bf16.msra.mxu0 %v789_v59 }
  0xf6   :  { %737 = vmatprep.subr.bf16.mxu0 %v875_v4 }
  0xf9   :  { %738 = vmatpush3.bf16.msra.mxu0 %v790_v21 }
  0xfa   :  { %739 = vmatprep.subr.bf16.mxu0 %v875_v4 }
  0xfd   :  { %740 = vmatpush3.bf16.msra.mxu0 %v791_v60 }
  0xfe   :  { %741 = vmatprep.subr.bf16.mxu0 %v875_v4 }
 0x101   :  { %742 = vmatpush3.bf16.msra.mxu0 %v792_v61 }
 0x102   :  { %743 = vmatprep.subr.bf16.mxu0 %v875_v4 }
 0x105   :  { %744 = vmatpush3.bf16.msra.mxu0 %v793_v62 }
 0x106   :  { %745 = vmatprep.subr.bf16.mxu0 %v875_v4 }
 0x109   :  { %746 = vmatpush3.bf16.msra.mxu0 %v794_v63 }
 0x10a   :  { %747 = vmatprep.subr.bf16.mxu0 %v875_v4 }
 0x10d   :  { %748 = vmatpush3.bf16.msra.mxu0 %v795_v0 }
 0x1b0   :  { %v392_v1 = vpop.f32.mrf.mxu0  ;;  %v480_v2 = vpop.f32.mrf.mxu1 }
 0x1b1   :  { %v481_v5 = vadd.f32 %v480_v2, %v392_v1 }
 0x1b2   :  { %v711_v6 = vpop.f32.mrf.mxu0  ;;  %v731_v7 = vpop.f32.mrf.mxu1 }
 0x1b3   :  { %v493_v8 = vadd.f32 %v655_v3, %v481_v5 }
 0x1b4   :  { %v395_v9 = vpop.f32.mrf.mxu0  ;;  %v483_v10 = vpop.f32.mrf.mxu1 }
 0x1b5   :  { %v656_v11 = vmul.f32 -1.442695, %v493_v8 }
 0x1b6   :  { %v712_v12 = vpop.f32.mrf.mxu0  ;;  %v732_v13 = vpop.f32.mrf.mxu1 }
 0x1b7   :  { %800 = vpow2.f32 %v656_v11 }
 0x1c4   :  { %v801_v14 = vpop.eup %800 }
 0x1c5   :  { %v497_v4 = vadd.f32 1.0, %v801_v14 }
 0x1c7   :  { %802 = vrcp.f32 %v497_v4 }
 0x1d4   :  { %v803_v15 = vpop.eup %802 }
 0x1d5   :  { %v500_v16 = vmul.f32 %v803_v15, %v493_v8 }
 0x1d7   :  { %v501_v17 = vpack.c.bf16 %v500_v16, %v500_v16 }
 0x1d9   :  { %750 = vmatmul.mubr.bf16.vlgmr.msra.gmra.mxu0 %v501_v17 }
 0x299   :  { %v607_v19 = vpop.f32.mrf.mxu0 }
 0x29a   :  { %v608_v20 = vadd.f32 %v657_v18, %v607_v19 }
 0x29b   :  { %v751_v22 = vpop.f32.mrf.mxu0 }
 0x29c   :  { %613 = vst [vmem:[#allocation7] sm:$0xff] %v608_v20 }
 0x29d   :  { %v610_v23 = vpop.f32.mrf.mxu0 }
 0x29e   :  { %855 = shalt.err (!%p852_p0)
}
 0x29f   :  { %623 = dma.vmem_to_hbm [thread:$0]  %s621_s13, 128, %s997_s6, [#allocation4]   ;;  %v752_v24 = vpop.f32.mrf.mxu0 }
 0x2a0   :  { %868 = dma.done.wait [#allocation4], 128  }
 0x2a1   :  { %869 = vsyncadd [#allocation4], 4294967168 }
 0x2a2   :  { %627 = vsyncpa [#allocation3], 1 }
 0x2a3   :  { %628 = vsyncpa [#allocation6], 1 }
 0x2a4   :  { %629 = vsyncpa [#allocation4], 1 }

</bundles_post_ra>
